<compile_context>
chip_gen: v5e
topology: v5e:2x2
jax: 0.10.0
libtpu: 0.0.40
codegen_flags: <defaults>
</compile_context>

<pallas_src>
import functools

import jax
import jax.numpy as jnp
from jax.experimental import pallas as pl
from jax.experimental.pallas import tpu as pltpu


# ----------------------------------------------------------------------------
# Fused kernel
# ----------------------------------------------------------------------------
def _conv_block_kernel(x_ref, w1_ref, b1_ref, w2_ref, b2_ref, w3_ref, ws_ref,
                       b3s_ref, o_ref, pad_ref, *, H, W, pad, final_relu):
    """Fused ConvBlock for one batch element, channel-first layout.

    x_ref   : (1, Cin, H*W)        input, spatial flattened into lanes
    w1_ref  : (C1, Cin)            conv1 weights  (BN1 scale folded in)
    b1_ref  : (C1, 1)              BN1 shift
    w2_ref  : (9, C2, C1)          conv2 weights per 3x3 tap (BN2 scale folded)
    b2_ref  : (C2, 1)              BN2 shift
    w3_ref  : (C3, C2)             conv3 weights  (BN3 scale folded in)
    ws_ref  : (C3, Cin)            shortcut weights (BN_s scale folded in)
    b3s_ref : (C3, 1)              BN3 shift + BN_s shift
    o_ref   : (1, C3, H*W)         output (lane-dense)
    pad_ref : (C1, H*W + 2*pad)    VMEM scratch: out1 with zero halos so the
                                   vertical 3x3 taps read real zeros
    """
    HW = H * W
    cdt = w1_ref.dtype                      # MXU input dtype (f32 or bf16)

    x = x_ref[0]                            # (Cin, HW)

    # ---- conv1 (1x1) + bn1 + ReLU -> (C1, HW) in f32 -------------------------
    out1 = jnp.dot(w1_ref[...], x, preferred_element_type=jnp.float32)
    out1 = jnp.maximum(out1 + b1_ref[...], 0.0)

    # ---- conv2 (3x3, pad=1) + bn2 + ReLU, fully in VMEM ----------------------
    # Zero the padded scratch, drop out1 in the middle (aligned store), then
    # read the 9 shifted taps back.  Vertical out-of-bounds taps hit the zero
    # halo; horizontal wrap-around is masked with a per-lane column mask.
    pad_ref[...] = jnp.zeros_like(pad_ref)
    pad_ref[:, pad:pad + HW] = out1.astype(cdt)

    col = jax.lax.broadcasted_iota(jnp.int32, (1, HW), 1)
    wpos = col % W                          # column index of every lane

    acc2 = None
    tap = 0
    for dh in (-1, 0, 1):
        for dw in (-1, 0, 1):
            start = pad + dh * W + dw
            src = pad_ref[:, start:start + HW]          # (C1, HW) shifted view
            if dw == -1:                                # col 0 has no left nbr
                src = jnp.where(wpos >= 1, src, 0)
            elif dw == 1:                               # col W-1 has no right nbr
                src = jnp.where(wpos <= W - 2, src, 0)
            contrib = jnp.dot(w2_ref[tap], src.astype(cdt),
                              preferred_element_type=jnp.float32)
            acc2 = contrib if acc2 is None else acc2 + contrib
            tap += 1
    out2 = jnp.maximum(acc2 + b2_ref[...], 0.0)         # (C2, HW) f32

    # ---- conv3 (1x1) + bn3  +  shortcut (1x1) + bn_s  + add (+ ReLU) ---------
    out = (jnp.dot(w3_ref[...], out2.astype(cdt),
                   preferred_element_type=jnp.float32)
           + jnp.dot(ws_ref[...], x, preferred_element_type=jnp.float32)
           + b3s_ref[...])
    if final_relu:
        out = jnp.maximum(out, 0.0)
    o_ref[0] = out.astype(o_ref.dtype)


# ----------------------------------------------------------------------------
# Wrapper: BN folding + pallas_call
# ----------------------------------------------------------------------------
def _bn_fold(gamma, beta, mean, var, eps=1e-5):
    scale = gamma / jnp.sqrt(var + eps)
    shift = beta - mean * scale
    return scale, shift


def conv_block_forward(x_nchw, params, *, stride=1, final_relu=True,
                       compute_dtype=jnp.float32, eps=1e-5):
    """Fused Pallas ConvBlock forward.  Input and output are NCHW (PyTorch)."""
    if stride != 1:
        # TODO(synk): stride > 1 needs a strided lane-gather of the conv2 /
        # shortcut outputs inside the fused kernel; not implemented here.
        raise NotImplementedError("fused ConvBlock kernel supports stride=1 only")

    N, Cin, H, W = x_nchw.shape
    HW = H * W
    pad = max(128, W + 1)                    # halo width (keeps out1 store aligned)

    w1 = params["w1"][:, :, 0, 0]            # (C1, Cin)
    w2 = params["w2"]                        # (C2, C1, 3, 3)
    w3 = params["w3"][:, :, 0, 0]            # (C3, C2)
    ws = params["ws"][:, :, 0, 0]            # (C3, Cin)
    C1, C2, C3 = w1.shape[0], w2.shape[0], w3.shape[0]

    s1, b1 = _bn_fold(*params["bn1"], eps=eps)
    s2, b2 = _bn_fold(*params["bn2"], eps=eps)
    s3, b3 = _bn_fold(*params["bn3"], eps=eps)
    ss, bs = _bn_fold(*params["bns"], eps=eps)

    # Fold BN scale into the conv weights; keep shifts as (C, 1) f32 biases.
    w1s = (w1 * s1[:, None]).astype(compute_dtype)
    w2s = jnp.transpose(w2 * s2[:, None, None, None], (2, 3, 0, 1))   # (kh,kw,C2,C1)
    w2s = w2s.reshape(9, C2, C1).astype(compute_dtype)                # tap-major
    w3s = (w3 * s3[:, None]).astype(compute_dtype)
    wss = (ws * ss[:, None]).astype(compute_dtype)
    b1c = b1[:, None].astype(jnp.float32)
    b2c = b2[:, None].astype(jnp.float32)
    b3sc = (b3 + bs)[:, None].astype(jnp.float32)

    xf = x_nchw.reshape(N, Cin, HW).astype(compute_dtype)

    itemsize = jnp.dtype(compute_dtype).itemsize
    flops = 2 * N * HW * (Cin * C1 + 9 * C1 * C2 + C2 * C3 + Cin * C3)
    bytes_accessed = (N * Cin * HW * itemsize                       # input
                      + N * C3 * HW * 4                             # output
                      + (C1 * Cin + 9 * C2 * C1 + C3 * C2 + C3 * Cin) * itemsize
                      + (C1 + C2 + C3) * 4)                         # biases

    out = pl.pallas_call(
        functools.partial(_conv_block_kernel, H=H, W=W, pad=pad,
                          final_relu=final_relu),
        out_shape=jax.ShapeDtypeStruct((N, C3, HW), jnp.float32),
        grid_spec=pltpu.PrefetchScalarGridSpec(
            num_scalar_prefetch=0,
            grid=(N,),
            in_specs=[
                pl.BlockSpec((1, Cin, HW), lambda n: (n, 0, 0)),
                pl.BlockSpec((C1, Cin), lambda n: (0, 0)),
                pl.BlockSpec((C1, 1), lambda n: (0, 0)),
                pl.BlockSpec((9, C2, C1), lambda n: (0, 0, 0)),
                pl.BlockSpec((C2, 1), lambda n: (0, 0)),
                pl.BlockSpec((C3, C2), lambda n: (0, 0)),
                pl.BlockSpec((C3, Cin), lambda n: (0, 0)),
                pl.BlockSpec((C3, 1), lambda n: (0, 0)),
            ],
            out_specs=pl.BlockSpec((1, C3, HW), lambda n: (n, 0, 0)),
            scratch_shapes=[pltpu.VMEM((C1, HW + 2 * pad), compute_dtype)],
        ),
        compiler_params=pltpu.CompilerParams(
            dimension_semantics=("parallel",),
            vmem_limit_bytes=32 * 1024 * 1024,
        ),
        cost_estimate=pl.CostEstimate(flops=flops, transcendentals=0,
                                      bytes_accessed=bytes_accessed),
    )(xf, w1s, b1c, w2s, b2c, w3s, wss, b3sc)

    return out.reshape(N, C3, H, W)          # already NCHW — no transpose needed


# ----------------------------------------------------------------------------
# Pure-JAX reference (lax.conv), for correctness checking only
# ----------------------------------------------------------------------------
def ref_forward(x_nchw, params, *, stride=1, final_relu=True, eps=1e-5):
    def conv(x, w, stride, pad):
        return jax.lax.conv_general_dilated(
            x, w, (stride, stride), [(pad, pad), (pad, pad)],
            dimension_numbers=("NCHW", "OIHW", "NCHW"))

    def bn(x, p):
        g, b, m, v = p
        g = g[None, :, None, None]; b = b[None, :, None, None]
        m = m[None, :, None, None]; v = v[None, :, None, None]
        return (x - m) / jnp.sqrt(v + eps) * g + b

    x = x_nchw.astype(jnp.float32)
    out = jax.nn.relu(bn(conv(x, params["w1"], 1, 0), params["bn1"]))
    out = jax.nn.relu(bn(conv(out, params["w2"], stride, 1), params["bn2"]))
    out = bn(conv(out, params["w3"], 1, 0), params["bn3"])
    out = out + bn(conv(x, params["ws"], stride, 0), params["bns"])
    if final_relu:
        out = jax.nn.relu(out)
    return out


# ----------------------------------------------------------------------------
def make_params(key, in_planes, filters):
    f1, f2, f3 = filters
    ks = jax.random.split(key, 12)

    def bn_params(kg, kb, c):
        gamma = 1.0 + 0.1 * jax.random.normal(kg, (c,), jnp.float32)
        beta = 0.1 * jax.random.normal(kb, (c,), jnp.float32)
        mean = 0.05 * jnp.arange(c, dtype=jnp.float32)
        var = 1.0 + 0.01 * jnp.arange(c, dtype=jnp.float32)
        return (gamma, beta, mean, var)

    return {
        "w1": 0.2 * jax.random.normal(ks[0], (f1, in_planes, 1, 1), jnp.float32),
        "w2": 0.2 * jax.random.normal(ks[1], (f2, f1, 3, 3), jnp.float32),
        "w3": 0.2 * jax.random.normal(ks[2], (f3, f2, 1, 1), jnp.float32),
        "ws": 0.2 * jax.random.normal(ks[3], (f3, in_planes, 1, 1), jnp.float32),
        "bn1": bn_params(ks[4], ks[5], f1),
        "bn2": bn_params(ks[6], ks[7], f2),
        "bn3": bn_params(ks[8], ks[9], f3),
        "bns": bn_params(ks[10], ks[11], f3),
    }


if __name__ == "__main__":
    # ConvBlock(in_planes=4, filters=(4, 4, 8), kernel_size=3, stride=1)
    key = jax.random.PRNGKey(0)
    kx, kp = jax.random.split(key)
    in_planes, filters, stride = 4, (4, 4, 8), 1
    x = jax.random.normal(kx, (2, in_planes, 16, 16), jnp.float32)   # NCHW
    params = make_params(kp, in_planes, filters)

    ref = jax.block_until_ready(
        ref_forward(x, params, stride=stride, final_relu=True))

    # f32 MXU path: tight check against the lax.conv reference.
    out_f32 = jax.block_until_ready(
        conv_block_forward(x, params, stride=stride, final_relu=True))
    assert out_f32.shape == (2, filters[2], 16, 16), out_f32.shape
    assert jnp.allclose(out_f32, ref, rtol=2e-4, atol=2e-4), \
        float(jnp.max(jnp.abs(out_f32 - ref)))

    # bf16 MXU path (f32 accumulation): loose check.
    out_bf16 = jax.block_until_ready(
        conv_block_forward(x, params, stride=stride, final_relu=True,
                           compute_dtype=jnp.bfloat16))
    assert jnp.allclose(out_bf16, ref, rtol=0.1, atol=0.3), \
        float(jnp.max(jnp.abs(out_bf16 - ref)))

    print("KERNEL_OK")
</pallas_src>

<mosaic_0001>
module attributes {stable_mosaic.version = 11 : i64} {
  func.func @_conv_block_kernel(%arg0: i32, %arg1: memref<1x4x256xf32, #tpu.memory_space<vmem>>, %arg2: memref<4x4xf32, #tpu.memory_space<vmem>>, %arg3: memref<4x1xf32, #tpu.memory_space<vmem>>, %arg4: memref<9x4x4xf32, #tpu.memory_space<vmem>>, %arg5: memref<4x1xf32, #tpu.memory_space<vmem>>, %arg6: memref<8x4xf32, #tpu.memory_space<vmem>>, %arg7: memref<8x4xf32, #tpu.memory_space<vmem>>, %arg8: memref<8x1xf32, #tpu.memory_space<vmem>>, %arg9: memref<1x8x256xf32, #tpu.memory_space<vmem>>, %arg10: memref<4x512xf32, #tpu.memory_space<vmem>>) attributes {dimension_semantics = [#tpu.dimension_semantics<parallel>], iteration_bounds = array<i64: 2>, scalar_prefetch = 0 : i64, scratch_operands = 1 : i64, tpu.core_type = #tpu.core_type<tc>, window_params = [{transform_indices = @transform_0, window_bounds = array<i64: 1, 4, 256>}, {pipeline_mode = #tpu.pipeline_mode<synchronous>, transform_indices = @transform_1, window_bounds = array<i64: 4, 4>}, {pipeline_mode = #tpu.pipeline_mode<synchronous>, transform_indices = @transform_2, window_bounds = array<i64: 4, 1>}, {pipeline_mode = #tpu.pipeline_mode<synchronous>, transform_indices = @transform_3, window_bounds = array<i64: 9, 4, 4>}, {pipeline_mode = #tpu.pipeline_mode<synchronous>, transform_indices = @transform_4, window_bounds = array<i64: 4, 1>}, {pipeline_mode = #tpu.pipeline_mode<synchronous>, transform_indices = @transform_5, window_bounds = array<i64: 8, 4>}, {pipeline_mode = #tpu.pipeline_mode<synchronous>, transform_indices = @transform_6, window_bounds = array<i64: 8, 4>}, {pipeline_mode = #tpu.pipeline_mode<synchronous>, transform_indices = @transform_7, window_bounds = array<i64: 8, 1>}, {transform_indices = @transform_8, window_bounds = array<i64: 1, 8, 256>}]} {
    %c0 = arith.constant 0 : index
    %c0_0 = arith.constant 0 : index
    %c0_1 = arith.constant 0 : index
    %0 = vector.load %arg1[%c0, %c0_0, %c0_1] : memref<1x4x256xf32, #tpu.memory_space<vmem>>, vector<1x4x256xf32>
    %1 = vector.shape_cast %0 : vector<1x4x256xf32> to vector<4x256xf32>
    %c0_2 = arith.constant 0 : index
    %c0_3 = arith.constant 0 : index
    %2 = vector.load %arg2[%c0_2, %c0_3] : memref<4x4xf32, #tpu.memory_space<vmem>>, vector<4x4xf32>
    %cst = arith.constant dense<0.000000e+00> : vector<4x256xf32>
    %3 = tpu.matmul %2, %1, %cst {dimension_numbers = #tpu.dot_dimension_numbers<[1], [0], [0], [1], [0, 0, 1, 1], [], []>} : vector<4x4xf32>, vector<4x256xf32>, vector<4x256xf32> -> vector<4x256xf32>
    %c0_4 = arith.constant 0 : index
    %c0_5 = arith.constant 0 : index
    %4 = vector.load %arg3[%c0_4, %c0_5] : memref<4x1xf32, #tpu.memory_space<vmem>>, vector<4x1xf32>
    %5 = vector.broadcast %4 : vector<4x1xf32> to vector<4x256xf32>
    %6 = arith.addf %3, %5 : vector<4x256xf32>
    %cst_6 = arith.constant 0.000000e+00 : f32
    %7 = vector.broadcast %cst_6 : f32 to vector<4x256xf32>
    %8 = arith.maximumf %6, %7 : vector<4x256xf32>
    %cst_7 = arith.constant 0.000000e+00 : f32
    %9 = vector.broadcast %cst_7 : f32 to vector<4x512xf32>
    %c0_8 = arith.constant 0 : index
    %c0_9 = arith.constant 0 : index
    %10 = vector.load %arg10[%c0_8, %c0_9] : memref<4x512xf32, #tpu.memory_space<vmem>>, vector<4x512xf32>
    tpu.vector_store %arg10[%c0_8, %c0_9], %9 {strides = array<i32>} : memref<4x512xf32, #tpu.memory_space<vmem>>, vector<4x512xf32>,
    %c0_10 = arith.constant 0 : index
    %c128 = arith.constant 128 : index
    %11 = vector.load %arg10[%c0_10, %c128] : memref<4x512xf32, #tpu.memory_space<vmem>>, vector<4x256xf32>
    tpu.vector_store %arg10[%c0_10, %c128], %8 {strides = array<i32>} : memref<4x512xf32, #tpu.memory_space<vmem>>, vector<4x256xf32>,
    %12 = tpu.iota {dimensions = array<i32: 1>} : vector<1x256xi32>
    %c16_i32 = arith.constant 16 : i32
    %c0_i32 = arith.constant 0 : i32
    %13 = arith.cmpi eq, %c16_i32, %c0_i32 : i32
    %c1_i32 = arith.constant 1 : i32
    %14 = arith.select %13, %c1_i32, %c16_i32 : i32
    %15 = vector.broadcast %14 : i32 to vector<1x256xi32>
    %16 = arith.remsi %12, %15 : vector<1x256xi32>
    %c0_i32_11 = arith.constant 0 : i32
    %17 = vector.broadcast %c0_i32_11 : i32 to vector<1x256xi32>
    %18 = arith.cmpi ne, %16, %17 : vector<1x256xi32>
    %c0_i32_12 = arith.constant 0 : i32
    %19 = vector.broadcast %c0_i32_12 : i32 to vector<1x256xi32>
    %20 = arith.cmpi slt, %16, %19 : vector<1x256xi32>
    %c0_i32_13 = arith.constant 0 : i32
    %21 = arith.cmpi slt, %14, %c0_i32_13 : i32
    %22 = vector.broadcast %21 : i1 to vector<1x256xi1>
    %23 = vector.broadcast %22 : vector<1x256xi1> to vector<1x256xi1>
    %24 = arith.xori %20, %23 : vector<1x256xi1>
    %25 = arith.andi %24, %18 : vector<1x256xi1>
    %26 = vector.broadcast %14 : i32 to vector<1x256xi32>
    %27 = arith.addi %16, %26 : vector<1x256xi32>
    %28 = arith.select %25, %27, %16 : vector<1x256xi1>, vector<1x256xi32>
    %c0_14 = arith.constant 0 : index
    %c111 = arith.constant 111 : index
    %29 = vector.load %arg10[%c0_14, %c111] : memref<4x512xf32, #tpu.memory_space<vmem>>, vector<4x256xf32>
    %c1_i32_15 = arith.constant 1 : i32
    %30 = vector.broadcast %c1_i32_15 : i32 to vector<1x256xi32>
    %31 = arith.cmpi sge, %28, %30 : vector<1x256xi32>
    %c0_i32_16 = arith.constant 0 : i32
    %32 = arith.sitofp %c0_i32_16 : i32 to f32
    %33 = vector.shape_cast %31 : vector<1x256xi1> to vector<1x256xi1>
    %34 = vector.broadcast %33 : vector<1x256xi1> to vector<4x256xi1>
    %35 = vector.broadcast %32 : f32 to vector<4x256xf32>
    %36 = arith.select %34, %29, %35 : vector<4x256xi1>, vector<4x256xf32>
    %c0_17 = arith.constant 0 : index
    %c0_18 = arith.constant 0 : index
    %c0_19 = arith.constant 0 : index
    %37 = vector.load %arg4[%c0_17, %c0_18, %c0_19] : memref<9x4x4xf32, #tpu.memory_space<vmem>>, vector<1x4x4xf32>
    %38 = vector.shape_cast %37 : vector<1x4x4xf32> to vector<4x4xf32>
    %cst_20 = arith.constant dense<0.000000e+00> : vector<4x256xf32>
    %39 = tpu.matmul %38, %36, %cst_20 {dimension_numbers = #tpu.dot_dimension_numbers<[1], [0], [0], [1], [0, 0, 1, 1], [], []>} : vector<4x4xf32>, vector<4x256xf32>, vector<4x256xf32> -> vector<4x256xf32>
    %c0_21 = arith.constant 0 : index
    %c112 = arith.constant 112 : index
    %40 = vector.load %arg10[%c0_21, %c112] : memref<4x512xf32, #tpu.memory_space<vmem>>, vector<4x256xf32>
    %c1 = arith.constant 1 : index
    %c0_22 = arith.constant 0 : index
    %c0_23 = arith.constant 0 : index
    %41 = vector.load %arg4[%c1, %c0_22, %c0_23] : memref<9x4x4xf32, #tpu.memory_space<vmem>>, vector<1x4x4xf32>
    %42 = vector.shape_cast %41 : vector<1x4x4xf32> to vector<4x4xf32>
    %cst_24 = arith.constant dense<0.000000e+00> : vector<4x256xf32>
    %43 = tpu.matmul %42, %40, %cst_24 {dimension_numbers = #tpu.dot_dimension_numbers<[1], [0], [0], [1], [0, 0, 1, 1], [], []>} : vector<4x4xf32>, vector<4x256xf32>, vector<4x256xf32> -> vector<4x256xf32>
    %44 = arith.addf %39, %43 : vector<4x256xf32>
    %c0_25 = arith.constant 0 : index
    %c113 = arith.constant 113 : index
    %45 = vector.load %arg10[%c0_25, %c113] : memref<4x512xf32, #tpu.memory_space<vmem>>, vector<4x256xf32>
    %c14_i32 = arith.constant 14 : i32
    %46 = vector.broadcast %c14_i32 : i32 to vector<1x256xi32>
    %47 = arith.cmpi sle, %28, %46 : vector<1x256xi32>
    %c0_i32_26 = arith.constant 0 : i32
    %48 = arith.sitofp %c0_i32_26 : i32 to f32
    %49 = vector.shape_cast %47 : vector<1x256xi1> to vector<1x256xi1>
    %50 = vector.broadcast %49 : vector<1x256xi1> to vector<4x256xi1>
    %51 = vector.broadcast %48 : f32 to vector<4x256xf32>
    %52 = arith.select %50, %45, %51 : vector<4x256xi1>, vector<4x256xf32>
    %c2 = arith.constant 2 : index
    %c0_27 = arith.constant 0 : index
    %c0_28 = arith.constant 0 : index
    %53 = vector.load %arg4[%c2, %c0_27, %c0_28] : memref<9x4x4xf32, #tpu.memory_space<vmem>>, vector<1x4x4xf32>
    %54 = vector.shape_cast %53 : vector<1x4x4xf32> to vector<4x4xf32>
    %cst_29 = arith.constant dense<0.000000e+00> : vector<4x256xf32>
    %55 = tpu.matmul %54, %52, %cst_29 {dimension_numbers = #tpu.dot_dimension_numbers<[1], [0], [0], [1], [0, 0, 1, 1], [], []>} : vector<4x4xf32>, vector<4x256xf32>, vector<4x256xf32> -> vector<4x256xf32>
    %56 = arith.addf %44, %55 : vector<4x256xf32>
    %c0_30 = arith.constant 0 : index
    %c127 = arith.constant 127 : index
    %57 = vector.load %arg10[%c0_30, %c127] : memref<4x512xf32, #tpu.memory_space<vmem>>, vector<4x256xf32>
    %c1_i32_31 = arith.constant 1 : i32
    %58 = vector.broadcast %c1_i32_31 : i32 to vector<1x256xi32>
    %59 = arith.cmpi sge, %28, %58 : vector<1x256xi32>
    %c0_i32_32 = arith.constant 0 : i32
    %60 = arith.sitofp %c0_i32_32 : i32 to f32
    %61 = vector.shape_cast %59 : vector<1x256xi1> to vector<1x256xi1>
    %62 = vector.broadcast %61 : vector<1x256xi1> to vector<4x256xi1>
    %63 = vector.broadcast %60 : f32 to vector<4x256xf32>
    %64 = arith.select %62, %57, %63 : vector<4x256xi1>, vector<4x256xf32>
    %c3 = arith.constant 3 : index
    %c0_33 = arith.constant 0 : index
    %c0_34 = arith.constant 0 : index
    %65 = vector.load %arg4[%c3, %c0_33, %c0_34] : memref<9x4x4xf32, #tpu.memory_space<vmem>>, vector<1x4x4xf32>
    %66 = vector.shape_cast %65 : vector<1x4x4xf32> to vector<4x4xf32>
    %cst_35 = arith.constant dense<0.000000e+00> : vector<4x256xf32>
    %67 = tpu.matmul %66, %64, %cst_35 {dimension_numbers = #tpu.dot_dimension_numbers<[1], [0], [0], [1], [0, 0, 1, 1], [], []>} : vector<4x4xf32>, vector<4x256xf32>, vector<4x256xf32> -> vector<4x256xf32>
    %68 = arith.addf %56, %67 : vector<4x256xf32>
    %c0_36 = arith.constant 0 : index
    %c128_37 = arith.constant 128 : index
    %69 = vector.load %arg10[%c0_36, %c128_37] : memref<4x512xf32, #tpu.memory_space<vmem>>, vector<4x256xf32>
    %c4 = arith.constant 4 : index
    %c0_38 = arith.constant 0 : index
    %c0_39 = arith.constant 0 : index
    %70 = vector.load %arg4[%c4, %c0_38, %c0_39] : memref<9x4x4xf32, #tpu.memory_space<vmem>>, vector<1x4x4xf32>
    %71 = vector.shape_cast %70 : vector<1x4x4xf32> to vector<4x4xf32>
    %cst_40 = arith.constant dense<0.000000e+00> : vector<4x256xf32>
    %72 = tpu.matmul %71, %69, %cst_40 {dimension_numbers = #tpu.dot_dimension_numbers<[1], [0], [0], [1], [0, 0, 1, 1], [], []>} : vector<4x4xf32>, vector<4x256xf32>, vector<4x256xf32> -> vector<4x256xf32>
    %73 = arith.addf %68, %72 : vector<4x256xf32>
    %c0_41 = arith.constant 0 : index
    %c129 = arith.constant 129 : index
    %74 = vector.load %arg10[%c0_41, %c129] : memref<4x512xf32, #tpu.memory_space<vmem>>, vector<4x256xf32>
    %c14_i32_42 = arith.constant 14 : i32
    %75 = vector.broadcast %c14_i32_42 : i32 to vector<1x256xi32>
    %76 = arith.cmpi sle, %28, %75 : vector<1x256xi32>
    %c0_i32_43 = arith.constant 0 : i32
    %77 = arith.sitofp %c0_i32_43 : i32 to f32
    %78 = vector.shape_cast %76 : vector<1x256xi1> to vector<1x256xi1>
    %79 = vector.broadcast %78 : vector<1x256xi1> to vector<4x256xi1>
    %80 = vector.broadcast %77 : f32 to vector<4x256xf32>
    %81 = arith.select %79, %74, %80 : vector<4x256xi1>, vector<4x256xf32>
    %c5 = arith.constant 5 : index
    %c0_44 = arith.constant 0 : index
    %c0_45 = arith.constant 0 : index
    %82 = vector.load %arg4[%c5, %c0_44, %c0_45] : memref<9x4x4xf32, #tpu.memory_space<vmem>>, vector<1x4x4xf32>
    %83 = vector.shape_cast %82 : vector<1x4x4xf32> to vector<4x4xf32>
    %cst_46 = arith.constant dense<0.000000e+00> : vector<4x256xf32>
    %84 = tpu.matmul %83, %81, %cst_46 {dimension_numbers = #tpu.dot_dimension_numbers<[1], [0], [0], [1], [0, 0, 1, 1], [], []>} : vector<4x4xf32>, vector<4x256xf32>, vector<4x256xf32> -> vector<4x256xf32>
    %85 = arith.addf %73, %84 : vector<4x256xf32>
    %c0_47 = arith.constant 0 : index
    %c143 = arith.constant 143 : index
    %86 = vector.load %arg10[%c0_47, %c143] : memref<4x512xf32, #tpu.memory_space<vmem>>, vector<4x256xf32>
    %c1_i32_48 = arith.constant 1 : i32
    %87 = vector.broadcast %c1_i32_48 : i32 to vector<1x256xi32>
    %88 = arith.cmpi sge, %28, %87 : vector<1x256xi32>
    %c0_i32_49 = arith.constant 0 : i32
    %89 = arith.sitofp %c0_i32_49 : i32 to f32
    %90 = vector.shape_cast %88 : vector<1x256xi1> to vector<1x256xi1>
    %91 = vector.broadcast %90 : vector<1x256xi1> to vector<4x256xi1>
    %92 = vector.broadcast %89 : f32 to vector<4x256xf32>
    %93 = arith.select %91, %86, %92 : vector<4x256xi1>, vector<4x256xf32>
    %c6 = arith.constant 6 : index
    %c0_50 = arith.constant 0 : index
    %c0_51 = arith.constant 0 : index
    %94 = vector.load %arg4[%c6, %c0_50, %c0_51] : memref<9x4x4xf32, #tpu.memory_space<vmem>>, vector<1x4x4xf32>
    %95 = vector.shape_cast %94 : vector<1x4x4xf32> to vector<4x4xf32>
    %cst_52 = arith.constant dense<0.000000e+00> : vector<4x256xf32>
    %96 = tpu.matmul %95, %93, %cst_52 {dimension_numbers = #tpu.dot_dimension_numbers<[1], [0], [0], [1], [0, 0, 1, 1], [], []>} : vector<4x4xf32>, vector<4x256xf32>, vector<4x256xf32> -> vector<4x256xf32>
    %97 = arith.addf %85, %96 : vector<4x256xf32>
    %c0_53 = arith.constant 0 : index
    %c144 = arith.constant 144 : index
    %98 = vector.load %arg10[%c0_53, %c144] : memref<4x512xf32, #tpu.memory_space<vmem>>, vector<4x256xf32>
    %c7 = arith.constant 7 : index
    %c0_54 = arith.constant 0 : index
    %c0_55 = arith.constant 0 : index
    %99 = vector.load %arg4[%c7, %c0_54, %c0_55] : memref<9x4x4xf32, #tpu.memory_space<vmem>>, vector<1x4x4xf32>
    %100 = vector.shape_cast %99 : vector<1x4x4xf32> to vector<4x4xf32>
    %cst_56 = arith.constant dense<0.000000e+00> : vector<4x256xf32>
    %101 = tpu.matmul %100, %98, %cst_56 {dimension_numbers = #tpu.dot_dimension_numbers<[1], [0], [0], [1], [0, 0, 1, 1], [], []>} : vector<4x4xf32>, vector<4x256xf32>, vector<4x256xf32> -> vector<4x256xf32>
    %102 = arith.addf %97, %101 : vector<4x256xf32>
    %c0_57 = arith.constant 0 : index
    %c145 = arith.constant 145 : index
    %103 = vector.load %arg10[%c0_57, %c145] : memref<4x512xf32, #tpu.memory_space<vmem>>, vector<4x256xf32>
    %c14_i32_58 = arith.constant 14 : i32
    %104 = vector.broadcast %c14_i32_58 : i32 to vector<1x256xi32>
    %105 = arith.cmpi sle, %28, %104 : vector<1x256xi32>
    %c0_i32_59 = arith.constant 0 : i32
    %106 = arith.sitofp %c0_i32_59 : i32 to f32
    %107 = vector.shape_cast %105 : vector<1x256xi1> to vector<1x256xi1>
    %108 = vector.broadcast %107 : vector<1x256xi1> to vector<4x256xi1>
    %109 = vector.broadcast %106 : f32 to vector<4x256xf32>
    %110 = arith.select %108, %103, %109 : vector<4x256xi1>, vector<4x256xf32>
    %c8 = arith.constant 8 : index
    %c0_60 = arith.constant 0 : index
    %c0_61 = arith.constant 0 : index
    %111 = vector.load %arg4[%c8, %c0_60, %c0_61] : memref<9x4x4xf32, #tpu.memory_space<vmem>>, vector<1x4x4xf32>
    %112 = vector.shape_cast %111 : vector<1x4x4xf32> to vector<4x4xf32>
    %cst_62 = arith.constant dense<0.000000e+00> : vector<4x256xf32>
    %113 = tpu.matmul %112, %110, %cst_62 {dimension_numbers = #tpu.dot_dimension_numbers<[1], [0], [0], [1], [0, 0, 1, 1], [], []>} : vector<4x4xf32>, vector<4x256xf32>, vector<4x256xf32> -> vector<4x256xf32>
    %114 = arith.addf %102, %113 : vector<4x256xf32>
    %c0_63 = arith.constant 0 : index
    %c0_64 = arith.constant 0 : index
    %115 = vector.load %arg5[%c0_63, %c0_64] : memref<4x1xf32, #tpu.memory_space<vmem>>, vector<4x1xf32>
    %116 = vector.broadcast %115 : vector<4x1xf32> to vector<4x256xf32>
    %117 = arith.addf %114, %116 : vector<4x256xf32>
    %cst_65 = arith.constant 0.000000e+00 : f32
    %118 = vector.broadcast %cst_65 : f32 to vector<4x256xf32>
    %119 = arith.maximumf %117, %118 : vector<4x256xf32>
    %c0_66 = arith.constant 0 : index
    %c0_67 = arith.constant 0 : index
    %120 = vector.load %arg6[%c0_66, %c0_67] : memref<8x4xf32, #tpu.memory_space<vmem>>, vector<8x4xf32>
    %cst_68 = arith.constant dense<0.000000e+00> : vector<8x256xf32>
    %121 = tpu.matmul %120, %119, %cst_68 {dimension_numbers = #tpu.dot_dimension_numbers<[1], [0], [0], [1], [0, 0, 1, 1], [], []>} : vector<8x4xf32>, vector<4x256xf32>, vector<8x256xf32> -> vector<8x256xf32>
    %c0_69 = arith.constant 0 : index
    %c0_70 = arith.constant 0 : index
    %122 = vector.load %arg7[%c0_69, %c0_70] : memref<8x4xf32, #tpu.memory_space<vmem>>, vector<8x4xf32>
    %cst_71 = arith.constant dense<0.000000e+00> : vector<8x256xf32>
    %123 = tpu.matmul %122, %1, %cst_71 {dimension_numbers = #tpu.dot_dimension_numbers<[1], [0], [0], [1], [0, 0, 1, 1], [], []>} : vector<8x4xf32>, vector<4x256xf32>, vector<8x256xf32> -> vector<8x256xf32>
    %124 = arith.addf %121, %123 : vector<8x256xf32>
    %c0_72 = arith.constant 0 : index
    %c0_73 = arith.constant 0 : index
    %125 = vector.load %arg8[%c0_72, %c0_73] : memref<8x1xf32, #tpu.memory_space<vmem>>, vector<8x1xf32>
    %126 = vector.broadcast %125 : vector<8x1xf32> to vector<8x256xf32>
    %127 = arith.addf %124, %126 : vector<8x256xf32>
    %cst_74 = arith.constant 0.000000e+00 : f32
    %128 = vector.broadcast %cst_74 : f32 to vector<8x256xf32>
    %129 = arith.maximumf %127, %128 : vector<8x256xf32>
    %c0_75 = arith.constant 0 : index
    %c0_76 = arith.constant 0 : index
    %c0_77 = arith.constant 0 : index
    %130 = vector.load %arg9[%c0_75, %c0_76, %c0_77] : memref<1x8x256xf32, #tpu.memory_space<vmem>>, vector<1x8x256xf32>
    %131 = vector.shape_cast %130 : vector<1x8x256xf32> to vector<8x256xf32>
    %132 = vector.shape_cast %129 : vector<8x256xf32> to vector<1x8x256xf32>
    tpu.vector_store %arg9[%c0_75, %c0_76, %c0_77], %132 {strides = array<i32>} : memref<1x8x256xf32, #tpu.memory_space<vmem>>, vector<1x8x256xf32>,
    return
  }
  func.func @transform_0(%arg0: i32) -> (i32, i32, i32) {
    %c0_i32 = arith.constant 0 : i32
    %c0_i32_0 = arith.constant 0 : i32
    %c0_i32_1 = arith.constant 0 : i32
    return %arg0, %c0_i32, %c0_i32_0 : i32, i32, i32
  }
  func.func @transform_1(%arg0: i32) -> (i32, i32) {
    %c0_i32 = arith.constant 0 : i32
    %c0_i32_0 = arith.constant 0 : i32
    %c0_i32_1 = arith.constant 0 : i32
    return %c0_i32, %c0_i32_0 : i32, i32
  }
  func.func @transform_2(%arg0: i32) -> (i32, i32) {
    %c0_i32 = arith.constant 0 : i32
    %c0_i32_0 = arith.constant 0 : i32
    %c0_i32_1 = arith.constant 0 : i32
    return %c0_i32, %c0_i32_0 : i32, i32
  }
  func.func @transform_3(%arg0: i32) -> (i32, i32, i32) {
    %c0_i32 = arith.constant 0 : i32
    %c0_i32_0 = arith.constant 0 : i32
    %c0_i32_1 = arith.constant 0 : i32
    %c0_i32_2 = arith.constant 0 : i32
    return %c0_i32, %c0_i32_0, %c0_i32_1 : i32, i32, i32
  }
  func.func @transform_4(%arg0: i32) -> (i32, i32) {
    %c0_i32 = arith.constant 0 : i32
    %c0_i32_0 = arith.constant 0 : i32
    %c0_i32_1 = arith.constant 0 : i32
    return %c0_i32, %c0_i32_0 : i32, i32
  }
  func.func @transform_5(%arg0: i32) -> (i32, i32) {
    %c0_i32 = arith.constant 0 : i32
    %c0_i32_0 = arith.constant 0 : i32
    %c0_i32_1 = arith.constant 0 : i32
    return %c0_i32, %c0_i32_0 : i32, i32
  }
  func.func @transform_6(%arg0: i32) -> (i32, i32) {
    %c0_i32 = arith.constant 0 : i32
    %c0_i32_0 = arith.constant 0 : i32
    %c0_i32_1 = arith.constant 0 : i32
    return %c0_i32, %c0_i32_0 : i32, i32
  }
  func.func @transform_7(%arg0: i32) -> (i32, i32) {
    %c0_i32 = arith.constant 0 : i32
    %c0_i32_0 = arith.constant 0 : i32
    %c0_i32_1 = arith.constant 0 : i32
    return %c0_i32, %c0_i32_0 : i32, i32
  }
  func.func @transform_8(%arg0: i32) -> (i32, i32, i32) {
    %c0_i32 = arith.constant 0 : i32
    %c0_i32_0 = arith.constant 0 : i32
    %c0_i32_1 = arith.constant 0 : i32
    return %arg0, %c0_i32, %c0_i32_0 : i32, i32, i32
  }
}

</mosaic_0001>

<bundles_post_ra>
// kernel: tpu_custom_call.1
= control target key start
LH: loop header
LB: loop body
LE: loop exit
PB: predicated region body
PF: predicated region fallthrough
CT: control target
= control target key end

     0   :  { %13 = vsyncpa [#allocation4], 0  ;;  %s1742_s0 = inlined_call_operand.vmem [shape: f32[2,4,256], index: 0, kind: input, shape index: {}]   ;;  %s1743_s1 = inlined_call_operand.vmem [shape: f32[4,4], index: 1, kind: input, shape index: {}]   ;;  %s1744_s2 = inlined_call_operand.vmem [shape: f32[4,1], index: 2, kind: input, shape index: {}]   ;;  %s1745_s3 = inlined_call_operand.vmem [shape: f32[9,4,4], index: 3, kind: input, shape index: {}]   ;;  %s1746_s4 = inlined_call_operand.vmem [shape: f32[4,1], index: 4, kind: input, shape index: {}]   ;;  %s1747_s5 = inlined_call_operand.vmem [shape: f32[8,4], index: 5, kind: input, shape index: {}]   ;;  %s1748_s6 = inlined_call_operand.vmem [shape: f32[8,4], index: 6, kind: input, shape index: {}]   ;;  %s1749_s7 = inlined_call_operand.vmem [shape: f32[8,1], index: 7, kind: input, shape index: {}]   ;;  %s1750_s8 = inlined_call_operand.hbm [shape: f32[2,8,256], index: 8, kind: output, shape index: {}]  }
   0x1   :  { %15 = vsyncpa [#allocation4 + $0x1], 0  ;;  %s1501_s27 = smov 0   ;;  %s1503_s28 = smov 0  }
   0x2   :  { %s1505_s29 = smov 0   ;;  %s1507_s30 = smov 0  }
   0x3 LB: > { %s1522_s9 = sadd.s32 4294967295, %s1444_s30   ;;  %s1260_s10 = sadd.s32 4294967294, %s1444_s30   ;;  %s1444_s30 = sphi %s1507_s30, %s1764_s30   ;;  %s1440_s29 = sphi %s1505_s29, %s1763_s29   ;;  %s1436_s28 = sphi %s1503_s28, %s1762_s28   ;;  %s1432_s27 = sphi %s1501_s27, %s1761_s27  }
   0x4   : > { %s1526_s11 = sadd.s32 1, %s1444_s30   ;;  %s201_s12 = sadd.s32 1, %s1440_s29 }
   0x5   : > { %s198_s13 = ssub.s32 %s1444_s30, %s1526_s11  ;;  %p211_p0 = scmp.ne.s32.totalorder %s1440_s29, %s1436_s28 }
   0x6   : > { %p199_p1 = scmp.eq.s32.totalorder %s198_s13, 0  ;;  %p212_p2 = scmp.eq.s32.totalorder %s1522_s9, 1 }
   0x7   : > { %p217_p3 = scmp.ne.s32.totalorder %s1436_s28, %s1432_s27  ;;  %p218_p4 = scmp.eq.s32.totalorder %s1260_s10, 1 }
   0x8   : > { %s1537_s14 = scalar_select %p199_p1, %s1440_s29, %s201_s12  }
   0x9   : > { %p1539_p5 = por %p212_p2, %p211_p0  ;;  %p1543_p6 = por %p218_p4, %p217_p3 }
   0xa   : > { %p1263_p7 = scmp.ge.s32.totalorder %s1444_s30, 1  ;;  %p265_p8 = scmp.lt.s32.totalorder %s1444_s30, 3 }
   0xc   : > { %p266_p9 = pnand %p1263_p7, %p265_p8 }
   0xd   : > { %p299_p10 = scmp.lt.s32.totalorder (!%p266_p9), %s1522_s9, 1  ;;  %s1448_s26 = smov (!%p266_p9), 17  }
   0xe   : > { %269 = sbr.rel (%p266_p9) target bundleno = 647 (0x287), region = 52  ;;  %s1449_s10 = smov (!%p266_p9), 16  }
   0xf   : > { %s1450_s12 = smov (!%p266_p9), 15   ;;  %s1451_s13 = smov (!%p266_p9), 1  }
  0x10   : > { %s1452_s17 = smov (!%p266_p9), 127   ;;  %s1453_s18 = smov (!%p266_p9), 113  }
  0x11   : > { %s296_s21 = sand.u32 (!%p266_p9), 1, %s1436_s28  }
  0x12   : > { %s1264_s22 = sshll.u32 (!%p266_p9), %s296_s21, 4 }
  0x13   : > { %v1446_v0 = vmov 0   ;;  %v306_v1 = vld [vmem:[%s1744_s2] sm:$0xf]  ;;  %s300_s19 = scalar_select %p299_p10, %s1522_s9, 1  ;;  %vm320_vm0 = vcmask 1043456   ;;  %vm316_vm1 = vcmask 31744   ;;  %v375_v51 = vlaneseq }
  0x14   : > { %1379 = vset.pattern.permute.xlu0 %v1446_v0  ;;  %1380 = vset.pattern.permute.xlu1 %v1446_v0  ;;  %v305_v3 = vld [vmem:[%s1743_s1] sm:$0xf]  ;;  %v1447_v6 = vmov 0.0   ;;  %vm424_vm2 = vcmask 138240   ;;  %vm571_vm5 = vcmask 121856   ;;  %vm450_vm6 = vcmask 130048  }
  0x15   : > { %309 = vperm.xlu0 %1379, %v306_v1   ;;  %1381 = vset.pattern.permute.xlu2 %v1446_v0  ;;  %s1328_s20 = sshll.u32 %s300_s19, 3  ;;  %367 = vst [vmem:[#allocation2] sm:$0xff] %v1447_v6  ;;  %s1454_s19 = smov 111   ;;  %v376_v53 = vand.u32 127, %v375_v51  ;;  %vm647_vm9 = vcmask 7168   ;;  %vm779_vm10 = vcmask 1039360  }
  0x16   : > { %s303_s23 = scalar_lea.vmem %s1742_s0, %s1328_s20  ;;  %368 = vst [vmem:[#allocation2 + $0x8] sm:$0xff] %v1447_v6  ;;  %s1455_s20 = smov 112   ;;  %vm855_vm11 = vcmask 924672   ;;  %vm1001_vm12 = vcmask 908288   ;;  %vm933_vm13 = vcmask 916480   ;;  %v1072_v6 = vld [vmem:[%s1748_s6] sm:$0xff] }
  0x17   : > { %v1557_v2 = vld [vmem:[%s303_s23] sm:$0xff]  ;;  %v377_v54 = vadd.s32 128, %v376_v53  ;;  %v382_v56 = vand.u32 15, %v376_v53  ;;  %v1305_v53 = vld [vmem:[%s1745_s3 + $0x1c] sm:$0xf]  ;;  %s1329_s23 = sshll.u32 %s1522_s9, 4 }
  0x18   : > { %313 = vst [vmem:[#allocation1] ss:$2 sm:$0xff] %v1557_v2 }
  0x19   : > { %v389_v57 = vand.u32 15, %v377_v54  ;;  %vm1581_vm3 = vcmp.ge.s32.totalorder %v382_v56, 1  ;;  %vm1601_vm7 = vcmp.le.s32.totalorder %v382_v56, 14 }
  0x1b   : > { %vm1585_vm4 = vcmp.ge.s32.totalorder %v389_v57, 1  ;;  %vm1615_vm8 = vcmp.le.s32.totalorder %v389_v57, 14 }
  0x1d   : > { %v764_v30 = vld [vmem:[#allocation2 + $0xc] sm:$0xf] }
  0x1e   : > { %v840_v34 = vld [vmem:[#allocation2 + $0xc] sm:$0xf] }
  0x1f   : > { %v314_v4 = vld.sshfl [vmem:[#allocation1] sm:$0xff pattern:$0x75316420]  ;;  %v315_v5 = vld.sshfl [vmem:[#allocation1 + $0x8] sm:$0xff pattern:$0x75316420] }
  0x20   : > { %1267 = vmatpush.msk.msra.mxu0 %vm320_vm0, %v314_v4  ;;  %1269 = vmatpush.msk.msra.mxu1 %vm320_vm0, %v315_v5  ;;  %v916_v38 = vld [vmem:[#allocation2 + $0xc] sm:$0xf] }
  0x21   : > { %1268 = vmatmul.msk.f32.vlgmr.msra.gmra.mxu0 %vm316_vm1, %v305_v3  ;;  %1270 = vmatmul.msk.f32.vlgmr.msra.gmra.mxu1 %vm316_vm1, %v305_v3  ;;  %v986_v42 = vld [vmem:[#allocation2 + $0xc] sm:$0xf] }
  0x87   : > { %v310_v7 = vpop.permute.xlu0 %309 }
  0x9e   : > { %v342_v8 = vpop.f32.mrf.mxu0  ;;  %v362_v9 = vpop.f32.mrf.mxu1 }
  0x9f   : > { %v343_v10 = vadd.f32 %v342_v8, %v310_v7  ;;  %v363_v11 = vadd.f32 %v362_v9, %v310_v7  ;;  %v1271_v9 = vld [vmem:[%s1745_s3 + $0x4] sm:$0xf] }
  0xa1   : > { %v366_v12 = vmax.f32 %v363_v11, 0.0  ;;  %v365_v13 = vmax.f32 %v343_v10, 0.0 }
  0xa3   : > { %v371_v14 = vrot.slane %v366_v12, 4 }
  0xa5   : > { %v1568_v15 = vsel %vm320_vm0, %v365_v13, %v371_v14 }
  0xa6   : > { %374 = vst [vmem:[#allocation2 + $0x4] sm:$0xff] %v1568_v15 }
  0xad   : > { %v402_v16 = vld [vmem:[#allocation2] sm:$0xff]  ;;  %v403_v17 = vld [vmem:[#allocation2 + $0x8] sm:$0xf] }
  0xae   : > { %412 = vst [vmem:[#allocation1] ss:$2 sm:$0xff] %v402_v16  ;;  %v433_v18 = vld [vmem:[#allocation2 + $0x8] sm:$0xf] }
  0xaf   : > { %414 = vst [vmem:[#allocation1 + $0x10] ss:$2 sm:$0xff] %v403_v17  ;;  %v550_v22 = vld [vmem:[#allocation2 + $0x8] sm:$0xf]  ;;  %v1280_v17 = vld [vmem:[%s1745_s3 + $0x8] sm:$0xf] }
  0xb0   : > { %v632_v26 = vld [vmem:[#allocation2 + $0x8] sm:$0xf] }
  0xb5   : > { %v416_v19 = vld.sshfl [vmem:[#allocation1 + $0x8] sm:$0xff pattern:$0x75316420]  ;;  %v415_v20 = vld.sshfl [vmem:[#allocation1] sm:$0xff pattern:$0x75316420] }
  0xb6   : > { %v417_v21 = vld.sshfl [vmem:[#allocation1 + $0x10] sm:$0xff pattern:$0x75316420]  ;;  %420 = vrot.lane.b32.xlu2 %v416_v19, %s1448_s26  ;;  %418 = vrot.lane.b32.xlu1 %v415_v20, %s1448_s26  ;;  %438 = vst [vmem:[#allocation1] ss:$2 sm:$0xff] %v402_v16 }
  0xb7   : > { %422 = vrot.lane.b32.xlu0 %v417_v21, %s1448_s26  ;;  %440 = vst [vmem:[#allocation1 + $0x10] ss:$2 sm:$0xff] %v433_v18  ;;  %s1196_s26 = scalar_lea.hbm %s1750_s8, %s1329_s23 }
  0xbd   : > { %v442_v23 = vld.sshfl [vmem:[#allocation1 + $0x8] sm:$0xff pattern:$0x75316420]  ;;  %v441_v24 = vld.sshfl [vmem:[#allocation1] sm:$0xff pattern:$0x75316420] }
  0xbe   : > { %446 = vrot.lane.b32.xlu1 %v442_v23, %s1449_s10  ;;  %559 = vst [vmem:[#allocation1] ss:$2 sm:$0xff] %v402_v16  ;;  %v443_v25 = vld.sshfl [vmem:[#allocation1 + $0x10] sm:$0xff pattern:$0x75316420] }
  0xbf   : > { %444 = vrot.lane.b32.xlu0 %v441_v24, %s1449_s10  ;;  %561 = vst [vmem:[#allocation1 + $0x10] ss:$2 sm:$0xff] %v550_v22  ;;  %v1285_v22 = vld [vmem:[%s1745_s3 + $0xc] sm:$0xf] }
  0xc5   : > { %v562_v27 = vld.sshfl [vmem:[#allocation1] sm:$0xff pattern:$0x75316420]  ;;  %v563_v28 = vld.sshfl [vmem:[#allocation1 + $0x8] sm:$0xff pattern:$0x75316420] }
  0xc6   : > { %448 = vrot.lane.b32.xlu1 %v443_v25, %s1449_s10  ;;  %v564_v29 = vld.sshfl [vmem:[#allocation1 + $0x10] sm:$0xff pattern:$0x75316420]  ;;  %565 = vrot.lane.b32.xlu2 %v562_v27, %s1450_s12  ;;  %635 = vst [vmem:[#allocation1] ss:$2 sm:$0xff] %v402_v16  ;;  %s298_s10 = scalar_lea.vmem [#allocation3], %s1264_s22 }
  0xc7   : > { %637 = vst [vmem:[#allocation1 + $0x10] ss:$2 sm:$0xff] %v632_v26  ;;  %569 = vrot.lane.b32.xlu0 %v564_v29, %s1450_s12  ;;  %v1290_v26 = vld [vmem:[%s1745_s3 + $0x10] sm:$0xf]  ;;  %s1402_s22 = scalar_lea.hbm %s1750_s8, 32 }
  0xcd   : > { %v638_v31 = vld.sshfl [vmem:[#allocation1] sm:$0xff pattern:$0x75316420]  ;;  %v639_v32 = vld.sshfl [vmem:[#allocation1 + $0x8] sm:$0xff pattern:$0x75316420] }
  0xce   : > { %v640_v33 = vld.sshfl [vmem:[#allocation1 + $0x10] sm:$0xff pattern:$0x75316420]  ;;  %567 = vrot.lane.b32.xlu2 %v563_v28, %s1450_s12  ;;  %641 = vrot.lane.b32.xlu1 %v638_v31, %s1451_s13  ;;  %711 = vst [vmem:[#allocation1] ss:$2 sm:$0xff] %v1568_v15  ;;  %s1198_s12 = sshll.u32 %s298_s10, 4  ;;  %s1199_s12 = int_to_ptr.vmem [resolvable:$true] %s1198_s12 }
  0xcf   : > { %769 = vst [vmem:[#allocation1 + $0x10] ss:$2 sm:$0xff] %v764_v30  ;;  %645 = vrot.lane.b32.xlu0 %v640_v33, %s1451_s13  ;;  %v1295_v30 = vld [vmem:[%s1745_s3 + $0x14] sm:$0xf] }
  0xd5   : > { %v1572_v35 = vld.sshfl [vmem:[#allocation1] sm:$0xff pattern:$0x75316420]  ;;  %v1574_v36 = vld.sshfl [vmem:[#allocation1 + $0x8] sm:$0xff pattern:$0x75316420] }
  0xd6   : > { %v772_v37 = vld.sshfl [vmem:[#allocation1 + $0x10] sm:$0xff pattern:$0x75316420]  ;;  %643 = vrot.lane.b32.xlu2 %v639_v32, %s1451_s13  ;;  %767 = vst [vmem:[#allocation1] ss:$2 sm:$0xff] %v1568_v15  ;;  %s1200_s13 = sshll.u32 %s1196_s26, 4  ;;  %s1201_s13 = int_to_ptr.hbm [resolvable:$true] %s1200_s13 }
  0xd7   : > { %845 = vst [vmem:[#allocation1 + $0x10] ss:$2 sm:$0xff] %v840_v34  ;;  %777 = vrot.lane.b32.xlu0 %v772_v37, %s1452_s17  ;;  %s1396_s9 = sshra.s32 %s1201_s13, 4  ;;  %s1397_s9 = int_to_ptr.hbm [resolvable:$true] %s1396_s9 }
  0xd8   : > { %p1403_p0 = scmp.lt.s32.totalorder %s1397_s9, %s1750_s8 }
  0xdd   : > { %v771_v39 = vld.sshfl [vmem:[#allocation1 + $0x8] sm:$0xff pattern:$0x75316420]  ;;  %v770_v40 = vld.sshfl [vmem:[#allocation1] sm:$0xff pattern:$0x75316420] }
  0xde   : > { %v848_v41 = vld.sshfl [vmem:[#allocation1 + $0x10] sm:$0xff pattern:$0x75316420]  ;;  %775 = vrot.lane.b32.xlu2 %v771_v39, %s1452_s17  ;;  %773 = vrot.lane.b32.xlu1 %v770_v40, %s1452_s17  ;;  %843 = vst [vmem:[#allocation1] ss:$2 sm:$0xff] %v1568_v15  ;;  %s1185_s17 = scalar_lea.sflag [#allocation4], %s296_s21 }
  0xdf   : > { %923 = vst [vmem:[#allocation1 + $0x10] ss:$2 sm:$0xff] %v916_v38  ;;  %853 = vrot.lane.b32.xlu0 %v848_v41, %s1453_s18  ;;  %v1300_v38 = vld [vmem:[%s1745_s3 + $0x18] sm:$0xf]  ;;  %v1061_v40 = vld [vmem:[%s1746_s4] sm:$0xf] }
  0xe5   : > { %v847_v43 = vld.sshfl [vmem:[#allocation1 + $0x8] sm:$0xff pattern:$0x75316420]  ;;  %v846_v44 = vld.sshfl [vmem:[#allocation1] sm:$0xff pattern:$0x75316420] }
  0xe6   : > { %v926_v45 = vld.sshfl [vmem:[#allocation1 + $0x10] sm:$0xff pattern:$0x75316420]  ;;  %851 = vrot.lane.b32.xlu2 %v847_v43, %s1453_s18  ;;  %849 = vrot.lane.b32.xlu1 %v846_v44, %s1453_s18  ;;  %921 = vst [vmem:[#allocation1] ss:$2 sm:$0xff] %v1568_v15  ;;  %s1398_s18 = scalar_lea.hbm %s1397_s9, 16 }
  0xe7   : > { %991 = vst [vmem:[#allocation1 + $0x10] ss:$2 sm:$0xff] %v986_v42  ;;  %p1399_p11 = scmp.ne.s32.totalorder %s1397_s9, %s1398_s18  ;;  %p1404_p1 = scmp.lt.s32.totalorder %s1402_s22, %s1398_s18 }
  0xe9   : > { %p1400_p12 = pnand %p1399_p11, %p1539_p5  ;;  %p1405_p2 = por %p1404_p1, %p1403_p0 }
  0xeb   : > { %p1401_p13 = pneg %p1400_p12 }
  0xed   : > { %v924_v46 = vld.sshfl [vmem:[#allocation1] sm:$0xff pattern:$0x75316420]  ;;  %v925_v47 = vld.sshfl [vmem:[#allocation1 + $0x8] sm:$0xff pattern:$0x75316420]  ;;  %p1406_p3 = pnand %p1405_p2, %p1401_p13 }
  0xee   : > { %989 = vst [vmem:[#allocation1] ss:$2 sm:$0xff] %v1568_v15  ;;  %v994_v48 = vld.sshfl [vmem:[#allocation1 + $0x10] sm:$0xff pattern:$0x75316420] }
  0xef   : > { %999 = vrot.lane.b32.xlu0 %v994_v48, %s1454_s19 }
  0xf5   : > { %v993_v49 = vld.sshfl [vmem:[#allocation1 + $0x8] sm:$0xff pattern:$0x75316420]  ;;  %v992_v50 = vld.sshfl [vmem:[#allocation1] sm:$0xff pattern:$0x75316420] }
  0xf6   : > { %997 = vrot.lane.b32.xlu2 %v993_v49, %s1454_s19  ;;  %995 = vrot.lane.b32.xlu1 %v992_v50, %s1454_s19  ;;  %1073 = vst [vmem:[#allocation1] ss:$2 sm:$0xff] %v1557_v2  ;;  %v431_v2 = vld [vmem:[%s1745_s3] sm:$0xf] }
  0xf7   : > { %931 = vrot.lane.b32.xlu0 %v926_v45, %s1455_s20 }
  0xfe   : > { %929 = vrot.lane.b32.xlu2 %v925_v47, %s1455_s20  ;;  %927 = vrot.lane.b32.xlu1 %v924_v46, %s1455_s20  ;;  %v1310_v47 = vld [vmem:[%s1745_s3 + $0x20] sm:$0xf] }
 0x106   : > { %1064 = vperm.xlu1 %1380, %v1061_v40  }
 0x110   : > { %v421_v52 = vpop.permute.xlu2 %420 }
 0x120   : > { %v566_v55 = vpop.permute.xlu2 %565 }
 0x128   : > { %v419_v59 = vpop.permute.xlu1 %418  ;;  %v568_v3 = vpop.permute.xlu2 %567 }
 0x129   : > { %v423_v61 = vpop.permute.xlu0 %422  ;;  %v425_v62 = vsel %vm424_vm2, %v419_v59, %v421_v52  ;;  %v572_v4 = vsel %vm571_vm5, %v566_v55, %v568_v3 }
 0x12a   : > { %v426_v63 = vsel %vm424_vm2, %v421_v52, %v423_v61  ;;  %v429_v0 = vsel %vm1581_vm3, %v425_v62, 0.0  ;;  %v576_v10 = vsel %vm1601_vm7, %v572_v4, 0.0  ;;  %v1074_v4 = vld.sshfl [vmem:[#allocation1] sm:$0xff pattern:$0x75316420] }
 0x12b   : > { %1276 = vmatpush.msk.msrb.mxu0 %vm320_vm0, %v429_v0  ;;  %v430_v1 = vsel %vm1585_vm4, %v426_v63, 0.0 }
 0x12c   : > { %1278 = vmatpush.msk.msrb.mxu1 %vm320_vm0, %v430_v1  ;;  %1277 = vmatmul.msk.f32.vlgmr.msrb.gmra.mxu0 %vm316_vm1, %v431_v2 }
 0x12d   : > { %1279 = vmatmul.msk.f32.vlgmr.msrb.gmra.mxu1 %vm316_vm1, %v431_v2 }
 0x130   : > { %v447_v5 = vpop.permute.xlu1 %446  ;;  %v644_v18 = vpop.permute.xlu2 %643 }
 0x131   : > { %v445_v7 = vpop.permute.xlu0 %444 }
 0x132   : > { %v451_v8 = vsel %vm450_vm6, %v445_v7, %v447_v5  ;;  %v1172_v7 = vld [vmem:[%s1749_s7] sm:$0xff] }
 0x133   : > { %1272 = vmatpush.msk.msra.mxu2 %vm320_vm0, %v451_v8  ;;  %1175 = vperm.xlu2 %1381, %v1172_v7  }
 0x134   : > { %1273 = vmatmul.msk.f32.vlgmr.msra.gmra.mxu2 %vm316_vm1, %v1271_v9 }
 0x135   : > { %1281 = vmatpush.msk.msrb.mxu2 %vm320_vm0, %v576_v10 }
 0x137   : > { %1291 = vmatpush.msk.msra.mxu2 %vm320_vm0, %v1572_v35 }
 0x138   : > { %v449_v11 = vpop.permute.xlu1 %448  ;;  %v776_v27 = vpop.permute.xlu2 %775 }
 0x139   : > { %v570_v13 = vpop.permute.xlu0 %569  ;;  %v452_v14 = vsel %vm450_vm6, %v447_v5, %v449_v11  ;;  %v1075_v5 = vld.sshfl [vmem:[#allocation1 + $0x8] sm:$0xff pattern:$0x75316420] }
 0x13a   : > { %v573_v15 = vsel %vm571_vm5, %v568_v3, %v570_v13  ;;  %1274 = vmatpush.msk.msra.mxu3 %vm320_vm0, %v452_v14 }
 0x13b   : > { %v577_v16 = vsel %vm1615_vm8, %v573_v15, 0.0  ;;  %1275 = vmatmul.msk.f32.vlgmr.msra.gmra.mxu3 %vm316_vm1, %v1271_v9 }
 0x13c   : > { %1283 = vmatpush.msk.msrb.mxu3 %vm320_vm0, %v577_v16  ;;  %1282 = vmatmul.msk.f32.vlgmr.msrb.gmra.mxu2 %vm316_vm1, %v1280_v17 }
 0x13e   : > { %1293 = vmatpush.msk.msra.mxu3 %vm320_vm0, %v1574_v36 }
 0x140   : > { %v642_v19 = vpop.permute.xlu1 %641  ;;  %v852_v33 = vpop.permute.xlu2 %851 }
 0x141   : > { %v646_v20 = vpop.permute.xlu0 %645  ;;  %v648_v21 = vsel %vm647_vm9, %v642_v19, %v644_v18 }
 0x142   : > { %v649_v23 = vsel %vm647_vm9, %v644_v18, %v646_v20  ;;  %v652_v24 = vsel %vm1581_vm3, %v648_v21, 0.0 }
 0x143   : > { %v653_v25 = vsel %vm1585_vm4, %v649_v23, 0.0  ;;  %1286 = vmatpush.msk.msra.mxu0 %vm320_vm0, %v652_v24  ;;  %1284 = vmatmul.msk.f32.vlgmr.msrb.gmra.mxu3 %vm316_vm1, %v1280_v17 }
 0x144   : > { %1288 = vmatpush.msk.msra.mxu1 %vm320_vm0, %v653_v25  ;;  %1287 = vmatmul.msk.f32.vlgmr.msra.gmra.mxu0 %vm316_vm1, %v1285_v22 }
 0x145   : > { %1292 = vmatmul.msk.f32.vlgmr.msra.gmra.mxu2 %vm316_vm1, %v1290_v26  ;;  %1289 = vmatmul.msk.f32.vlgmr.msra.gmra.mxu1 %vm316_vm1, %v1285_v22 }
 0x149   : > { %v778_v28 = vpop.permute.xlu0 %777 }
 0x14a   : > { %v781_v29 = vsel %vm779_vm10, %v776_v27, %v778_v28 }
 0x14b   : > { %v785_v31 = vsel %vm1615_vm8, %v781_v29, 0.0  ;;  %1294 = vmatmul.msk.f32.vlgmr.msra.gmra.mxu3 %vm316_vm1, %v1290_v26 }
 0x14c   : > { %1298 = vmatpush.msk.msrb.mxu1 %vm320_vm0, %v785_v31 }
 0x14d   : > { %1299 = vmatmul.msk.f32.vlgmr.msrb.gmra.mxu1 %vm316_vm1, %v1295_v30 }
 0x150   : > { %v774_v32 = vpop.permute.xlu1 %773  ;;  %v998_v44 = vpop.permute.xlu2 %997 }
 0x151   : > { %v854_v34 = vpop.permute.xlu0 %853  ;;  %v780_v35 = vsel %vm779_vm10, %v774_v32, %v776_v27 }
 0x152   : > { %v857_v36 = vsel %vm855_vm11, %v852_v33, %v854_v34  ;;  %v784_v37 = vsel %vm1601_vm7, %v780_v35, 0.0 }
 0x153   : > { %v861_v39 = vsel %vm1585_vm4, %v857_v36, 0.0  ;;  %1296 = vmatpush.msk.msrb.mxu0 %vm320_vm0, %v784_v37 }
 0x154   : > { %1303 = vmatpush.msk.msrb.mxu3 %vm320_vm0, %v861_v39  ;;  %1297 = vmatmul.msk.f32.vlgmr.msrb.gmra.mxu0 %vm316_vm1, %v1295_v30 }
 0x155   : > { %1304 = vmatmul.msk.f32.vlgmr.msrb.gmra.mxu3 %vm316_vm1, %v1300_v38 }
 0x158   : > { %v850_v41 = vpop.permute.xlu1 %849  ;;  %v930_v50 = vpop.permute.xlu2 %929 }
 0x159   : > { %v856_v42 = vsel %vm855_vm11, %v850_v41, %v852_v33  ;;  %v1071_v33 = vld [vmem:[%s1747_s5] sm:$0xff] }
 0x15a   : > { %v860_v43 = vsel %vm1581_vm3, %v856_v42, 0.0 }
 0x15b   : > { %1301 = vmatpush.msk.msrb.mxu2 %vm320_vm0, %v860_v43 }
 0x15c   : > { %1302 = vmatmul.msk.f32.vlgmr.msrb.gmra.mxu2 %vm316_vm1, %v1300_v38 }
 0x161   : > { %v1000_v45 = vpop.permute.xlu0 %999 }
 0x162   : > { %v1003_v46 = vsel %vm1001_vm12, %v998_v44, %v1000_v45 }
 0x163   : > { %v1007_v48 = vsel %vm1615_vm8, %v1003_v46, 0.0 }
 0x164   : > { %1313 = vmatpush.msk.msra.mxu3 %vm320_vm0, %v1007_v48 }
 0x165   : > { %1314 = vmatmul.msk.f32.vlgmr.msra.gmra.mxu3 %vm316_vm1, %v1310_v47 }
 0x168   : > { %v996_v49 = vpop.permute.xlu1 %995 }
 0x169   : > { %v932_v51 = vpop.permute.xlu0 %931  ;;  %v1002_v52 = vsel %vm1001_vm12, %v996_v49, %v998_v44 }
 0x16a   : > { %v935_v54 = vsel %vm933_vm13, %v930_v50, %v932_v51  ;;  %v1006_v55 = vsel %vm1601_vm7, %v1002_v52, 0.0 }
 0x16b   : > { %1308 = vmatpush.msk.msra.mxu1 %vm320_vm0, %v935_v54  ;;  %1311 = vmatpush.msk.msra.mxu2 %vm320_vm0, %v1006_v55 }
 0x16c   : > { %1309 = vmatmul.msk.f32.vlgmr.msra.gmra.mxu1 %vm316_vm1, %v1305_v53  ;;  %1312 = vmatmul.msk.f32.vlgmr.msra.gmra.mxu2 %vm316_vm1, %v1310_v47 }
 0x16d   : > { %1317 = vmatpush.msk.msrb.mxu1 %vm320_vm0, %v1075_v5 }
 0x170   : > { %v928_v56 = vpop.permute.xlu1 %927 }
 0x171   : > { %v934_v57 = vsel %vm933_vm13, %v928_v56, %v930_v50 }
 0x172   : > { %1306 = vmatpush.msk.msra.mxu0 %vm320_vm0, %v934_v57 }
 0x173   : > { %1307 = vmatmul.msk.f32.vlgmr.msra.gmra.mxu0 %vm316_vm1, %v1305_v53 }
 0x174   : > { %1315 = vmatpush.msk.msrb.mxu0 %vm320_vm0, %v1074_v4  ;;  %1318 = vmatmul.msk.f32.vlgmr.msrb.gmra.mxu1 %vm316_vm1, %v1072_v6 }
 0x178   : > { %v1065_v25 = vpop.permute.xlu1 %1064 }
 0x17b   : > { %1316 = vmatmul.msk.f32.vlgmr.msrb.gmra.mxu0 %vm316_vm1, %v1072_v6 }
 0x18d   : > { %v1176_v40 = vpop.permute.xlu2 %1175 }
 0x1a9   : > { %v526_v62 = vpop.f32.mrf.mxu0 }
 0x1aa   : > { %v546_v60 = vpop.f32.mrf.mxu1 }
 0x1b7   : > { %v477_v59 = vpop.f32.mrf.mxu2 }
 0x1b8   : > { %v527_v9 = vadd.f32 %v526_v62, %v477_v59 }
 0x1be   : > { %v497_v58 = vpop.f32.mrf.mxu3 }
 0x1bf   : > { %v547_v63 = vadd.f32 %v546_v60, %v497_v58  ;;  %v606_v0 = vpop.f32.mrf.mxu2 }
 0x1c0   : > { %v629_v13 = vadd.f32 %v606_v0, %v527_v9 }
 0x1c1   : > { %v682_v10 = vpop.f32.mrf.mxu0 }
 0x1c2   : > { %v702_v1 = vpop.f32.mrf.mxu1  ;;  %v705_v17 = vadd.f32 %v682_v10, %v629_v13 }
 0x1c6   : > { %v626_v61 = vpop.f32.mrf.mxu3 }
 0x1c7   : > { %v630_v3 = vadd.f32 %v626_v61, %v547_v63 }
 0x1c8   : > { %v738_v11 = vpop.f32.mrf.mxu2 }
 0x1c9   : > { %v706_v8 = vadd.f32 %v702_v1, %v630_v3  ;;  %v761_v21 = vadd.f32 %v738_v11, %v705_v17 }
 0x1ca   : > { %v834_v14 = vpop.f32.mrf.mxu1 }
 0x1ce   : > { %v758_v2 = vpop.f32.mrf.mxu3 }
 0x1cf   : > { %v762_v12 = vadd.f32 %v758_v2, %v706_v8 }
 0x1d1   : > { %v838_v16 = vadd.f32 %v834_v14, %v762_v12  ;;  %v814_v18 = vpop.f32.mrf.mxu0 }
 0x1d2   : > { %v837_v27 = vadd.f32 %v814_v18, %v761_v21 }
 0x1d8   : > { %v910_v15 = vpop.f32.mrf.mxu3 }
 0x1d9   : > { %v914_v19 = vadd.f32 %v910_v15, %v838_v16 }
 0x1df   : > { %v890_v20 = vpop.f32.mrf.mxu2 }
 0x1e0   : > { %v913_v29 = vadd.f32 %v890_v20, %v837_v27 }
 0x1e8   : > { %v1056_v23 = vpop.f32.mrf.mxu3 }
 0x1e9   : > { %v980_v22 = vpop.f32.mrf.mxu1 }
 0x1ea   : > { %v984_v24 = vadd.f32 %v980_v22, %v914_v19 }
 0x1ec   : > { %v1060_v26 = vadd.f32 %v1056_v23, %v984_v24 }
 0x1ee   : > { %v1068_v28 = vadd.f32 %v1065_v25, %v1060_v26 }
 0x1ef   : > { %v1036_v32 = vpop.f32.mrf.mxu2 }
 0x1f0   : > { %v1070_v30 = vmax.f32 %v1068_v28, 0.0  ;;  %v960_v31 = vpop.f32.mrf.mxu0 }
 0x1f1   : > { %v983_v34 = vadd.f32 %v960_v31, %v913_v29  ;;  %v1120_v38 = vpop.f32.mrf.mxu1 }
 0x1f2   : > { %1321 = vmatpush.msk.msrb.mxu3 %vm320_vm0, %v1070_v30 }
 0x1f3   : > { %v1059_v35 = vadd.f32 %v1036_v32, %v983_v34  ;;  %1322 = vmatmul.msk.f32.vlgmr.msrb.gmra.mxu3 %vm316_vm1, %v1071_v33 }
 0x1f5   : > { %v1067_v36 = vadd.f32 %v1065_v25, %v1059_v35 }
 0x1f7   : > { %v1069_v37 = vmax.f32 %v1067_v36, 0.0 }
 0x1f8   : > { %v1100_v43 = vpop.f32.mrf.mxu0 }
 0x1f9   : > { %1319 = vmatpush.msk.msrb.mxu2 %vm320_vm0, %v1069_v37 }
 0x1fa   : > { %1320 = vmatmul.msk.f32.vlgmr.msrb.gmra.mxu2 %vm316_vm1, %v1071_v33 }
 0x276   : > { %v1169_v39 = vpop.f32.mrf.mxu3 }
 0x277   : > { %v1170_v41 = vadd.f32 %v1169_v39, %v1120_v38 }
 0x279   : > { %v1179_v42 = vadd.f32 %v1176_v40, %v1170_v41 }
 0x27b   : > { %v1181_v44 = vmax.f32 %v1179_v42, 0.0 }
 0x27d   : > { %v1149_v45 = vpop.f32.mrf.mxu2  ;;  %1183 = vst [vmem:[%s298_s10 + $0x8] sm:$0xff] %v1181_v44 }
 0x27e   : > { %v1150_v46 = vadd.f32 %v1149_v45, %v1100_v43 }
 0x280   : > { %v1178_v47 = vadd.f32 %v1176_v40, %v1150_v46 }
 0x282   : > { %v1180_v48 = vmax.f32 %v1178_v47, 0.0 }
 0x284   : > { %1182 = vst [vmem:[%s298_s10] sm:$0xff] %v1180_v48 }
 0x285   : > { %1409 = shalt.err (!%p1406_p3)
}
 0x286   : > { %1330 = dma.vmem_to_hbm [thread:$0]  (%p1539_p5), %s1199_s12, 256, %s1201_s13, %s1185_s17  }
 0x287 PF: > { %p1336_p4 = scmp.ge.s32.totalorder %s1444_s30, 2  ;;  %s1212_s21 = sand.u32 1, %s1432_s27  }
 0x288   : > { %s1213_s25 = scalar_lea.sflag [#allocation4], %s1212_s21 }
 0x289   : > { %p1333_p7 = pnand %p1336_p4, %p1543_p6 }
 0x28b   : > { %p1334_p8 = pneg %p1333_p7 }
 0x28d   : > { %1427 = dma.done.wait (%p1334_p8), %s1213_s25, 256  }
 0x28e   : > { %1429 = vsyncadd (%p1334_p8), %s1213_s25, 4294967040  ;;  %p18_p9 = scmp.ge.s32.totalorder %s1526_s11, 4   ;;  %s1761_s27 = smov %s1436_s28 }
 0x28f   : > { %s1762_s28 = smov %s1440_s29  ;;  %s1763_s29 = smov %s1537_s14 }
 0x290   : > { %s1764_s30 = smov %s1526_s11  ;;  %20 = sbr.rel (!%p18_p9) target bundleno = 3 (0x3), region = 103 }
 0x295   :  { %1219 = vsyncpa [#allocation4], 1 }
 0x296   :  { %1221 = vsyncpa [#allocation4 + $0x1], 1 }

</bundles_post_ra>
